<compile_context>
chip_gen: v5e
topology: v5e:2x2
jax: 0.10.0
libtpu: 0.0.40
codegen_flags: <defaults>
</compile_context>

<pallas_src>
import functools

import jax
import jax.numpy as jnp
from jax.experimental import pallas as pl
from jax.experimental.pallas import tpu as pltpu


def _patch_encoder_kernel(patch_ref, tab_ref, o_ref, *, d, max_fre):
    # patch_ref: (TM, d+1)          raw rows: [x_0..x_{d-1}, position(float)]
    # tab_ref:   (d+max_fre, P)     fused [W ; emb_table + bias]
    # o_ref:     (TM, P)
    blk = patch_ref[...]
    tm = blk.shape[0]
    ktot = d + max_fre

    # Position index: truncate like torch .to(int); clamp like JAX gather semantics.
    pos = blk[:, d:d + 1].astype(jnp.int32)            # (TM, 1)
    pos = jnp.clip(pos, 0, max_fre - 1)

    # Augmented LHS  [ x | one-hot(pos) ]  of shape (TM, d + max_fre), built without an
    # in-kernel minor-dim concat: one-hot occupies columns [d, d+max_fre), then the d
    # feature columns are spliced in with cheap per-column selects (d is small/static).
    cols = jax.lax.broadcasted_iota(jnp.int32, (tm, ktot), 1)
    aug = (cols == (pos + d)).astype(jnp.float32)      # one-hot part
    for j in range(d):                                  # static unroll, d is tiny
        aug += (cols == j).astype(jnp.float32) * blk[:, j:j + 1]

    # One fused MXU call: x @ W + onehot @ (emb + b).
    o_ref[...] = jnp.dot(aug, tab_ref[...],
                         preferred_element_type=jnp.float32).astype(o_ref.dtype)


def _pick_tile_m(m, requested):
    tm = min(requested, m)
    # Keep >= 2 grid steps so v7x's two TensorCores both get work (no-op on v5e/v6e).
    if m > 8 and pl.cdiv(m, tm) < 2:
        tm = pl.cdiv(m, 2)
    if m >= 8:
        tm = max(8, (tm // 8) * 8)                      # sublane-aligned row tiles
    return tm


def patch_encoder(patch, w, b, emb_table, *, num_patches, tile_m=1024,
                  vmem_limit_bytes=None):
    """patch: (B, num_patches, input_dim + 1) float32.  w: (input_dim, P)  (torch W^T)."""
    B, N, Dp1 = patch.shape
    assert N == num_patches
    D = Dp1 - 1
    P = w.shape[1]
    max_fre = emb_table.shape[0]
    M = B * N

    # Fused RHS: [W ; emb_table + bias]  -> (D + max_fre, P).  Bias folding is exact
    # because every output row receives exactly one embedding row.
    fused_tab = jnp.concatenate([w, emb_table + b[None, :]], axis=0)

    # Flatten batch/patch dims (free, row-major view) — no feature/position split in HBM.
    flat = patch.reshape(M, Dp1)

    tm = _pick_tile_m(M, tile_m)
    grid_m = pl.cdiv(M, tm)
    m_pad = grid_m * tm
    if m_pad != M:
        # Padded rows get pos=0 -> valid index, results are sliced off below.
        flat = jnp.pad(flat, ((0, m_pad - M), (0, 0)))

    if vmem_limit_bytes is None:
        # Double-buffered input/output tiles + resident fused table (also double-buffered
        # by the pipeline even with a constant index_map), plus slack.  Cap at v7x's
        # 64 MiB physical VMEM; v5e's 16 MiB scoped default is explicitly raised.
        need = 2 * (tm * Dp1 * 4 + (D + max_fre) * P * 4 + tm * P * 4) + (1 << 20)
        vmem_limit_bytes = int(min(max(need, 32 << 20), 64 << 20))

    kernel = functools.partial(_patch_encoder_kernel, d=D, max_fre=max_fre)

    out = pl.pallas_call(
        kernel,
        out_shape=jax.ShapeDtypeStruct((m_pad, P), jnp.float32),
        grid_spec=pltpu.PrefetchScalarGridSpec(
            num_scalar_prefetch=0,
            grid=(grid_m,),
            in_specs=[
                pl.BlockSpec((tm, Dp1), lambda i: (i, 0)),            # raw patch rows
                pl.BlockSpec((D + max_fre, P), lambda i: (0, 0)),     # fused table (resident)
            ],
            out_specs=pl.BlockSpec((tm, P), lambda i: (i, 0)),
        ),
        compiler_params=pltpu.CompilerParams(
            dimension_semantics=("parallel",),
            vmem_limit_bytes=vmem_limit_bytes,
        ),
    )(flat, fused_tab)

    if m_pad != M:
        out = out[:M]
    return out.reshape(B, N, P)


def _reference(patch, w, b, emb_table):
    # Pure-JAX reference mirroring the PyTorch forward.
    pos = patch[:, :, -1].astype(jnp.int32)
    feats = patch[:, :, :-1]
    return feats @ w + b + emb_table[pos]


if __name__ == "__main__":
    key = jax.random.PRNGKey(0)
    B = 2
    num_patches = 8
    input_dim = 4
    max_fre = 16
    projection_dim = 128   # multiple of 128 -> lane-dense (unmasked) output stores

    k1, k2, k3, k4, k5 = jax.random.split(key, 5)

    # torch Linear weight is (out, in); we store its transpose (in, out).
    w = (jax.random.normal(k1, (input_dim, projection_dim), jnp.float32)
         * (1.0 / jnp.sqrt(input_dim)))
    b = jax.random.normal(k2, (projection_dim,), jnp.float32) * 0.01
    emb_table = jax.random.normal(k3, (max_fre, projection_dim), jnp.float32)

    # Input patch: features + integer-valued position column.
    feats = jax.random.normal(k4, (B, num_patches, input_dim), jnp.float32)
    positions = jax.random.randint(k5, (B, num_patches), 0, max_fre)
    patch = jnp.concatenate(
        [feats, positions.astype(jnp.float32)[..., None]], axis=-1)   # (B, N, input_dim+1)

    out = patch_encoder(patch, w, b, emb_table, num_patches=num_patches)
    out = jax.block_until_ready(out)

    ref = _reference(patch, w, b, emb_table)
    assert out.shape == (B, num_patches, projection_dim)
    assert jnp.allclose(out, ref, atol=1e-5, rtol=1e-5)

    print("KERNEL_OK")
</pallas_src>

<mosaic_0001>
module attributes {stable_mosaic.version = 11 : i64} {
  func.func @_patch_encoder_kernel(%arg0: i32, %arg1: memref<8x5xf32, #tpu.memory_space<vmem>>, %arg2: memref<20x128xf32, #tpu.memory_space<vmem>>, %arg3: memref<8x128xf32, #tpu.memory_space<vmem>>) attributes {dimension_semantics = [#tpu.dimension_semantics<parallel>], iteration_bounds = array<i64: 2>, scalar_prefetch = 0 : i64, scratch_operands = 0 : i64, tpu.core_type = #tpu.core_type<tc>, window_params = [{transform_indices = @transform_0, window_bounds = array<i64: 8, 5>}, {pipeline_mode = #tpu.pipeline_mode<synchronous>, transform_indices = @transform_1, window_bounds = array<i64: 20, 128>}, {transform_indices = @transform_2, window_bounds = array<i64: 8, 128>}]} {
    %c0 = arith.constant 0 : index
    %c0_0 = arith.constant 0 : index
    %0 = vector.load %arg1[%c0, %c0_0] : memref<8x5xf32, #tpu.memory_space<vmem>>, vector<8x5xf32>
    %1 = vector.extract_strided_slice %0 {offsets = [0, 4], sizes = [8, 1], strides = [1, 1]} : vector<8x5xf32> to vector<8x1xf32>
    %2 = arith.fptosi %1 : vector<8x1xf32> to vector<8x1xi32>
    %c0_i32 = arith.constant 0 : i32
    %c15_i32 = arith.constant 15 : i32
    %3 = vector.broadcast %c0_i32 : i32 to vector<8x1xi32>
    %4 = arith.maxsi %3, %2 : vector<8x1xi32>
    %5 = vector.broadcast %c15_i32 : i32 to vector<8x1xi32>
    %6 = arith.minsi %5, %4 : vector<8x1xi32>
    %7 = tpu.iota {dimensions = array<i32: 1>} : vector<8x20xi32>
    %c4_i32 = arith.constant 4 : i32
    %8 = vector.broadcast %c4_i32 : i32 to vector<8x1xi32>
    %9 = arith.addi %6, %8 : vector<8x1xi32>
    %10 = vector.broadcast %9 : vector<8x1xi32> to vector<8x20xi32>
    %11 = arith.cmpi eq, %7, %10 : vector<8x20xi32>
    %12 = arith.extui %11 : vector<8x20xi1> to vector<8x20xi32>
    %13 = arith.sitofp %12 : vector<8x20xi32> to vector<8x20xf32>
    %c0_i32_1 = arith.constant 0 : i32
    %14 = vector.broadcast %c0_i32_1 : i32 to vector<8x20xi32>
    %15 = arith.cmpi eq, %7, %14 : vector<8x20xi32>
    %16 = arith.extui %15 : vector<8x20xi1> to vector<8x20xi32>
    %17 = arith.sitofp %16 : vector<8x20xi32> to vector<8x20xf32>
    %18 = vector.extract_strided_slice %0 {offsets = [0, 0], sizes = [8, 1], strides = [1, 1]} : vector<8x5xf32> to vector<8x1xf32>
    %19 = vector.broadcast %18 : vector<8x1xf32> to vector<8x20xf32>
    %20 = arith.mulf %17, %19 : vector<8x20xf32>
    %21 = arith.addf %13, %20 : vector<8x20xf32>
    %c1_i32 = arith.constant 1 : i32
    %22 = vector.broadcast %c1_i32 : i32 to vector<8x20xi32>
    %23 = arith.cmpi eq, %7, %22 : vector<8x20xi32>
    %24 = arith.extui %23 : vector<8x20xi1> to vector<8x20xi32>
    %25 = arith.sitofp %24 : vector<8x20xi32> to vector<8x20xf32>
    %26 = vector.extract_strided_slice %0 {offsets = [0, 1], sizes = [8, 1], strides = [1, 1]} : vector<8x5xf32> to vector<8x1xf32>
    %27 = vector.broadcast %26 : vector<8x1xf32> to vector<8x20xf32>
    %28 = arith.mulf %25, %27 : vector<8x20xf32>
    %29 = arith.addf %21, %28 : vector<8x20xf32>
    %c2_i32 = arith.constant 2 : i32
    %30 = vector.broadcast %c2_i32 : i32 to vector<8x20xi32>
    %31 = arith.cmpi eq, %7, %30 : vector<8x20xi32>
    %32 = arith.extui %31 : vector<8x20xi1> to vector<8x20xi32>
    %33 = arith.sitofp %32 : vector<8x20xi32> to vector<8x20xf32>
    %34 = vector.extract_strided_slice %0 {offsets = [0, 2], sizes = [8, 1], strides = [1, 1]} : vector<8x5xf32> to vector<8x1xf32>
    %35 = vector.broadcast %34 : vector<8x1xf32> to vector<8x20xf32>
    %36 = arith.mulf %33, %35 : vector<8x20xf32>
    %37 = arith.addf %29, %36 : vector<8x20xf32>
    %c3_i32 = arith.constant 3 : i32
    %38 = vector.broadcast %c3_i32 : i32 to vector<8x20xi32>
    %39 = arith.cmpi eq, %7, %38 : vector<8x20xi32>
    %40 = arith.extui %39 : vector<8x20xi1> to vector<8x20xi32>
    %41 = arith.sitofp %40 : vector<8x20xi32> to vector<8x20xf32>
    %42 = vector.extract_strided_slice %0 {offsets = [0, 3], sizes = [8, 1], strides = [1, 1]} : vector<8x5xf32> to vector<8x1xf32>
    %43 = vector.broadcast %42 : vector<8x1xf32> to vector<8x20xf32>
    %44 = arith.mulf %41, %43 : vector<8x20xf32>
    %45 = arith.addf %37, %44 : vector<8x20xf32>
    %c0_2 = arith.constant 0 : index
    %c0_3 = arith.constant 0 : index
    %46 = vector.load %arg2[%c0_2, %c0_3] : memref<20x128xf32, #tpu.memory_space<vmem>>, vector<20x128xf32>
    %cst = arith.constant dense<0.000000e+00> : vector<8x128xf32>
    %47 = tpu.matmul %45, %46, %cst {dimension_numbers = #tpu.dot_dimension_numbers<[1], [0], [0], [1], [0, 0, 1, 1], [], []>} : vector<8x20xf32>, vector<20x128xf32>, vector<8x128xf32> -> vector<8x128xf32>
    %c0_4 = arith.constant 0 : index
    %c0_5 = arith.constant 0 : index
    %48 = vector.load %arg3[%c0_4, %c0_5] : memref<8x128xf32, #tpu.memory_space<vmem>>, vector<8x128xf32>
    tpu.vector_store %arg3[%c0_4, %c0_5], %47 {strides = array<i32>} : memref<8x128xf32, #tpu.memory_space<vmem>>, vector<8x128xf32>,
    return
  }
  func.func @transform_0(%arg0: i32) -> (i32, i32) {
    %c0_i32 = arith.constant 0 : i32
    %c0_i32_0 = arith.constant 0 : i32
    return %arg0, %c0_i32 : i32, i32
  }
  func.func @transform_1(%arg0: i32) -> (i32, i32) {
    %c0_i32 = arith.constant 0 : i32
    %c0_i32_0 = arith.constant 0 : i32
    %c0_i32_1 = arith.constant 0 : i32
    return %c0_i32, %c0_i32_0 : i32, i32
  }
  func.func @transform_2(%arg0: i32) -> (i32, i32) {
    %c0_i32 = arith.constant 0 : i32
    %c0_i32_0 = arith.constant 0 : i32
    return %arg0, %c0_i32 : i32, i32
  }
}

</mosaic_0001>

<bundles_post_ra>
// kernel: tpu_custom_call.1
= control target key start
LH: loop header
LB: loop body
LE: loop exit
PB: predicated region body
PF: predicated region fallthrough
CT: control target
= control target key end

     0   :  { %7 = vsyncpa [#allocation3], 0  ;;  %s550_s0 = inlined_call_operand.vmem [shape: f32[16,5], index: 0, kind: input, shape index: {}]   ;;  %s551_s1 = inlined_call_operand.vmem [shape: f32[20,128], index: 1, kind: input, shape index: {}]   ;;  %s552_s2 = inlined_call_operand.hbm [shape: f32[16,128], index: 2, kind: output, shape index: {}]  }
   0x1   :  { %9 = vsyncpa [#allocation3 + $0x1], 0  ;;  %s456_s9 = smov 0   ;;  %s458_s10 = smov 0  }
   0x2   :  { %s460_s11 = smov 0   ;;  %s462_s12 = smov 0  }
   0x3 LB: > { %s477_s13 = sadd.s32 4294967295, %s433_s12   ;;  %s298_s14 = sadd.s32 4294967294, %s433_s12   ;;  %s433_s12 = sphi %s462_s12, %s558_s12   ;;  %s429_s11 = sphi %s460_s11, %s557_s11   ;;  %s425_s10 = sphi %s458_s10, %s556_s10   ;;  %s421_s9 = sphi %s456_s9, %s555_s9  }
   0x4   : > { %s481_s15 = sadd.s32 1, %s433_s12   ;;  %s69_s16 = sadd.s32 1, %s429_s11 }
   0x5   : > { %s66_s17 = ssub.s32 %s433_s12, %s481_s15  ;;  %p79_p0 = scmp.ne.s32.totalorder %s429_s11, %s425_s10 }
   0x6   : > { %p67_p1 = scmp.eq.s32.totalorder %s66_s17, 0  ;;  %p80_p2 = scmp.eq.s32.totalorder %s477_s13, 1 }
   0x7   : > { %p85_p3 = scmp.ne.s32.totalorder %s425_s10, %s421_s9  ;;  %p86_p4 = scmp.eq.s32.totalorder %s298_s14, 1 }
   0x8   : > { %s492_s18 = scalar_select %p67_p1, %s429_s11, %s69_s16  }
   0x9   : > { %p494_p5 = por %p80_p2, %p79_p0  ;;  %p498_p6 = por %p86_p4, %p85_p3 }
   0xa   : > { %p301_p7 = scmp.ge.s32.totalorder %s433_s12, 1  ;;  %p114_p8 = scmp.lt.s32.totalorder %s433_s12, 3 }
   0xc   : > { %p115_p9 = pnand %p301_p7, %p114_p8 }
   0xd   : > { %p135_p10 = scmp.lt.s32.totalorder (!%p115_p9), %s477_s13, 1  ;;  %s132_s4 = sand.u32 (!%p115_p9), 1, %s425_s10  }
   0xe   : > { %118 = sbr.rel (%p115_p9) target bundleno = 298 (0x12a), region = 28  ;;  %s302_s5 = sshll.u32 (!%p115_p9), %s132_s4, 3 }
   0xf   : > { %s312_s6 = sshll.u32 (!%p115_p9), %s477_s13, 3  ;;  %s134_s16 = scalar_lea.vmem (!%p115_p9), [#allocation2], %s302_s5 }
  0x10   : > { %s234_s14 = scalar_lea.hbm (!%p115_p9), %s552_s2, %s312_s6  ;;  %s236_s17 = sshll.u32 (!%p115_p9), %s134_s16, 4  ;;  %s237_s17 = int_to_ptr.vmem [resolvable:$true] %s236_s17 }
  0x11   : > { %s391_s26 = scalar_lea.hbm (!%p115_p9), %s552_s2, 16 }
  0x13   : > { %v435_v0 = vmov 4   ;;  %v436_v1 = vmov 1   ;;  %s136_s21 = scalar_select %p135_p10, %s477_s13, 1  ;;  %v437_v2 = vmov 3   ;;  %v438_v10 = vmov 2   ;;  %v192_v14 = vld [vmem:[%s551_s1 + $0x8] sm:$0xff] }
  0x14   : > { %365 = vset.pattern.permute.xlu0 %v435_v0  ;;  %367 = vset.pattern.permute.xlu1 %v436_v1  ;;  %v439_v12 = vmov 0   ;;  %v193_v13 = vld [vmem:[%s551_s1 + $0x10] sm:$0xf]  ;;  %vm198_vm3 = vcmask 1043456   ;;  %v191_v15 = vld [vmem:[%s551_s1] sm:$0xff]  ;;  %v145_v16 = vlaneseq  ;;  %v440_v20 = vmov 0.0  }
  0x15   : > { %369 = vset.pattern.permute.xlu2 %v437_v2  ;;  %s303_s22 = sshll.u32 %s136_s21, 3  ;;  %309 = vmatpush.msk.msra.mxu0 %vm198_vm3, %v193_v13  ;;  %vm194_vm9 = vcmask 162816   ;;  %s238_s21 = sshll.u32 %s234_s14, 4  ;;  %s239_s21 = int_to_ptr.hbm [resolvable:$true] %s238_s21 }
  0x16   : > { %s138_s25 = scalar_lea.vmem %s550_s0, %s303_s22  ;;  %v146_v19 = vand.u32 127, %v145_v16  ;;  %s224_s22 = scalar_lea.sflag [#allocation3], %s132_s4 }
  0x17   : > { %v139_v3 = vld [vmem:[%s138_s25] sm:$0xff]  ;;  %216 = vmatpush.msra.mxu0 %v192_v14  ;;  %s385_s23 = sshra.s32 %s239_s21, 4  ;;  %s386_s23 = int_to_ptr.hbm [resolvable:$true] %s385_s23 }
  0x18   : > { %vm315_vm0 = vcmp.lt.s32.totalorder %v139_v3, 0  ;;  %v316_v4 = vceil.f32 %v139_v3  ;;  %v317_v5 = vfloor.f32 %v139_v3  ;;  %168 = vperm.xlu1 %367, %v139_v3   ;;  %186 = vperm.xlu2 %369, %v139_v3   ;;  %vm154_vm4 = vcmp.eq.s32.totalorder %v146_v19, 0  ;;  %s387_s24 = scalar_lea.hbm %s386_s23, 8  ;;  %p392_p0 = scmp.lt.s32.totalorder %s386_s23, %s552_s2 }
  0x19   : > { %217 = vmatpush.msra.mxu0 %v191_v15  ;;  %vm164_vm5 = vcmp.eq.s32.totalorder %v146_v19, 1  ;;  %vm173_vm6 = vcmp.eq.s32.totalorder %v146_v19, 2  ;;  %v305_v21 = vsel %vm154_vm4, 1.0, %v440_v20  ;;  %vm182_vm8 = vcmp.eq.s32.totalorder %v146_v19, 3  ;;  %p388_p11 = scmp.ne.s32.totalorder %s386_s23, %s387_s24  ;;  %p393_p1 = scmp.lt.s32.totalorder %s391_s26, %s387_s24 }
  0x1a   : > { %v318_v6 = vsel %vm315_vm0, %v316_v4, %v317_v5  ;;  %v306_v22 = vsel %vm164_vm5, 1.0, %v440_v20  ;;  %v307_v24 = vsel %vm173_vm6, 1.0, %v440_v20  ;;  %v308_v28 = vsel %vm182_vm8, 1.0, %v440_v20 }
  0x1b   : > { %v319_v7 = vcvt.f32.s32 %v318_v6  ;;  %p389_p12 = pnand %p388_p11, %p494_p5  ;;  %p394_p2 = por %p393_p1, %p392_p0 }
  0x1d   : > { %vm141_vm1 = vcmp.gt.s32.totalorder %v319_v7, 0  ;;  %p390_p13 = pneg %p389_p12 }
  0x1e   : > { %v142_v8 = vsel %vm141_vm1, %v319_v7, 0 }
  0x1f   : > { %vm143_vm2 = vcmp.lt.s32.totalorder %v142_v8, 15  ;;  %p395_p3 = pnand %p394_p2, %p390_p13 }
  0x20   : > { %v144_v9 = vsel %vm143_vm2, %v142_v8, 15  ;;  %368 = vset.pattern.permute.xlu1 %v438_v10 }
  0x21   : > { %v147_v11 = vadd.s32 4, %v144_v9  ;;  %177 = vperm.xlu1 %368, %v139_v3  }
  0x23   : > { %149 = vperm.xlu0 %365, %v147_v11  }
  0x2b   : > { %366 = vset.pattern.permute.xlu0 %v439_v12 }
  0x2c   : > { %159 = vperm.xlu0 %366, %v139_v3  }
  0x34   : > { %370 = vset.pattern.permute.xlu0 %v437_v2 }
  0x72   : > { %v187_v29 = vpop.permute.xlu2 %186 }
  0x73   : > { %v189_v34 = vmul.f32 %v308_v28, %v187_v29 }
  0x8a   : > { %v169_v17 = vpop.permute.xlu1 %168 }
  0x8b   : > { %v171_v30 = vmul.f32 %v306_v22, %v169_v17 }
  0x93   : > { %v178_v25 = vpop.permute.xlu1 %177 }
  0x94   : > { %v180_v32 = vmul.f32 %v307_v24, %v178_v25 }
  0x95   : > { %v150_v18 = vpop.permute.xlu0 %149 }
  0x96   : > { %vm151_vm7 = vcmp.eq.s32.totalorder %v146_v19, %v150_v18 }
  0x97   : > { %v304_v27 = vsel %vm151_vm7, 1.0, %v440_v20 }
  0x9e   : > { %v160_v23 = vpop.permute.xlu0 %159 }
  0x9f   : > { %v162_v26 = vmul.f32 %v305_v21, %v160_v23 }
  0xa1   : > { %v163_v31 = vadd.f32 %v304_v27, %v162_v26 }
  0xa3   : > { %v172_v33 = vadd.f32 %v171_v30, %v163_v31 }
  0xa5   : > { %v181_v35 = vadd.f32 %v180_v32, %v172_v33 }
  0xa7   : > { %v190_v36 = vadd.f32 %v189_v34, %v181_v35 }
  0xa9   : > { %310 = vmatmul.msk.f32.vlgmr.msra.gmra.mxu0 %vm194_vm9, %v190_v36 }
 0x126   : > { %v219_v37 = vpop.f32.mrf.mxu0 }
 0x127   : > { %222 = vst [vmem:[%s134_s16] sm:$0xff] %v219_v37 }
 0x128   : > { %398 = shalt.err (!%p395_p3)
}
 0x129   : > { %320 = dma.vmem_to_hbm [thread:$0]  (%p494_p5), %s237_s17, 128, %s239_s21, %s224_s22  }
 0x12a PF: > { %p326_p4 = scmp.ge.s32.totalorder %s433_s12, 2  ;;  %s250_s29 = sand.u32 1, %s421_s9  }
 0x12b   : > { %s251_s30 = scalar_lea.sflag [#allocation3], %s250_s29 }
 0x12c   : > { %p323_p7 = pnand %p326_p4, %p498_p6 }
 0x12e   : > { %p324_p8 = pneg %p323_p7 }
 0x130   : > { %416 = dma.done.wait (%p324_p8), %s251_s30, 128  }
 0x131   : > { %418 = vsyncadd (%p324_p8), %s251_s30, 4294967168  ;;  %p12_p9 = scmp.ge.s32.totalorder %s481_s15, 4   ;;  %s555_s9 = smov %s425_s10 }
 0x132   : > { %s556_s10 = smov %s429_s11  ;;  %s557_s11 = smov %s492_s18 }
 0x133   : > { %s558_s12 = smov %s481_s15  ;;  %14 = sbr.rel (!%p12_p9) target bundleno = 3 (0x3), region = 63 }
 0x138   :  { %257 = vsyncpa [#allocation3], 1 }
 0x139   :  { %259 = vsyncpa [#allocation3 + $0x1], 1 }

</bundles_post_ra>
